<compile_context>
chip_gen: v7x
topology: tpu7x:2x2x1
jax: 0.10.0
libtpu: 0.0.40
codegen_flags: <defaults>
</compile_context>

<pallas_src>
import jax
import jax.numpy as jnp
from jax.experimental import pallas as pl
from jax.experimental.pallas import tpu as pltpu


def double_kernel(x_ref, o_ref):
    # Elementwise x + x on the VPU — never the bottleneck; DMA is.
    x = x_ref[...]
    o_ref[...] = x + x


# Scoped-VMEM limit: safe on v5e/v6e (128 MiB phys) and v7x (64 MiB phys).
_VMEM_LIMIT = 32 * 1024 * 1024
# Per-block byte budget.  in + out, each double-buffered => 4 x block bytes
# live in VMEM; 4 x 6 MiB = 24 MiB stays under _VMEM_LIMIT with headroom.
_BLOCK_BUDGET = 6 * 1024 * 1024
# Cap on the lane-dim tile (keeps blocks in the measured sweet spot).
_MAX_TILE_N = 4096


def _sublane_multiple(dtype):
    # f32 -> 8, bf16/f16 -> 16, int8/fp8 -> 32 (packed-sublane min tiles).
    itemsize = jnp.dtype(dtype).itemsize
    return {4: 8, 2: 16, 1: 32}.get(itemsize, 8)


def _lane_dense_2d(total):
    """Pick a lane-dense (M, N) factorization of `total` elements."""
    for n in (4096, 2048, 1024, 512, 256, 128):
        if total % n == 0:
            return total // n, n
    # Fallback: single row; the lane dim is tiled in 128-multiples below and
    # the ragged final block is handled by Pallas masking.
    return 1, total


def _double_2d(x2d):
    """Pallas foo + foo on a 2-D array."""
    M, N = x2d.shape
    itemsize = jnp.dtype(x2d.dtype).itemsize
    total_bytes = M * N * itemsize

    # ---- small-input fast path: one block == whole array, no grid at all ----
    if 2 * total_bytes <= _VMEM_LIMIT // 2:
        return pl.pallas_call(
            double_kernel,
            out_shape=jax.ShapeDtypeStruct((M, N), x2d.dtype),
            compiler_params=pltpu.CompilerParams(
                vmem_limit_bytes=_VMEM_LIMIT,
            ),
        )(x2d)

    # ---- large-input path: 2-D tiled grid, biggest blocks within budget ----
    sub = _sublane_multiple(x2d.dtype)

    # Lane (last-dim) tile: full N when modest, else a multiple of 128 so
    # stores stay unmasked / lane-dense.
    tile_n = N if N <= _MAX_TILE_N else _MAX_TILE_N

    # Row tile: as many rows as fit the per-block budget, aligned to the
    # dtype's sublane multiple (or the full M when M is small / ragged).
    rows = max(_BLOCK_BUDGET // (tile_n * itemsize), 1)
    if rows >= M:
        tile_m = M
    else:
        tile_m = min(max((rows // sub) * sub, sub), M)

    grid = (pl.cdiv(M, tile_m), pl.cdiv(N, tile_n))

    return pl.pallas_call(
        double_kernel,
        out_shape=jax.ShapeDtypeStruct((M, N), x2d.dtype),
        grid_spec=pltpu.PrefetchScalarGridSpec(
            num_scalar_prefetch=0,
            grid=grid,
            in_specs=[pl.BlockSpec((tile_m, tile_n), lambda i, j: (i, j))],
            out_specs=pl.BlockSpec((tile_m, tile_n), lambda i, j: (i, j)),
        ),
        compiler_params=pltpu.CompilerParams(
            # Both axes are independent -> megacore sharding on v7x.
            dimension_semantics=("parallel", "parallel"),
            vmem_limit_bytes=_VMEM_LIMIT,
        ),
    )(x2d)


def module2_forward(foo):
    """Pallas implementation of Module2.forward: returns foo + foo.

    Accepts any-rank input; internally normalizes to a lane-dense 2-D view
    (free, elementwise op) and restores the original shape on return.
    """
    orig_shape = foo.shape
    total = 1
    for d in orig_shape:
        total *= d
    if total == 0:
        return foo + foo  # degenerate empty tensor

    M, N = _lane_dense_2d(total)
    out2d = _double_2d(foo.reshape(M, N))
    return out2d.reshape(orig_shape)


if __name__ == "__main__":
    key = jax.random.PRNGKey(0)

    # Primary small shape (module takes an arbitrary tensor).
    foo = jax.random.normal(key, (8, 128), dtype=jnp.float32)
    out = jax.block_until_ready(module2_forward(foo))
    ref = foo + foo
    assert out.shape == ref.shape and out.dtype == ref.dtype
    assert jnp.allclose(out, ref, atol=1e-6, rtol=1e-6)

    # Arbitrary-rank small input (exercises the 2-D normalization path).
    foo4 = jax.random.normal(jax.random.PRNGKey(0), (2, 4, 16, 16), dtype=jnp.float32)
    out4 = jax.block_until_ready(module2_forward(foo4))
    ref4 = foo4 + foo4
    assert out4.shape == ref4.shape and out4.dtype == ref4.dtype
    assert jnp.allclose(out4, ref4, atol=1e-6, rtol=1e-6)

    # Larger input exercising the tiled (gridded) path.
    big = jax.random.normal(jax.random.PRNGKey(0), (4096, 1024), dtype=jnp.float32)  # 16 MiB
    out_big = jax.block_until_ready(module2_forward(big))
    ref_big = big + big
    assert out_big.shape == ref_big.shape and out_big.dtype == ref_big.dtype
    assert jnp.allclose(out_big, ref_big, atol=1e-6, rtol=1e-6)

    print("KERNEL_OK")
</pallas_src>

<mosaic_0001>
module attributes {stable_mosaic.version = 11 : i64} {
  func.func @double_kernel(%arg0: memref<1x1024xf32, #tpu.memory_space<vmem>>, %arg1: memref<1x1024xf32, #tpu.memory_space<vmem>>) attributes {dimension_semantics = [], scalar_prefetch = 0 : i64, scratch_operands = 0 : i64, tpu.core_type = #tpu.core_type<tc>} {
    %c0 = arith.constant 0 : index
    %c0_0 = arith.constant 0 : index
    %0 = vector.load %arg0[%c0, %c0_0] : memref<1x1024xf32, #tpu.memory_space<vmem>>, vector<1x1024xf32>
    %1 = arith.addf %0, %0 : vector<1x1024xf32>
    %c0_1 = arith.constant 0 : index
    %c0_2 = arith.constant 0 : index
    %2 = vector.load %arg1[%c0_1, %c0_2] : memref<1x1024xf32, #tpu.memory_space<vmem>>, vector<1x1024xf32>
    tpu.vector_store %arg1[%c0_1, %c0_2], %1 {strides = array<i32>} : memref<1x1024xf32, #tpu.memory_space<vmem>>, vector<1x1024xf32>,
    return
  }
}

</mosaic_0001>

<bundles_post_ra>
// kernel: tpu_custom_call.1
= control target key start
LH: loop header
LB: loop body
LE: loop exit
PB: predicated region body
PF: predicated region fallthrough
CT: control target
= control target key end

     0   :  { %6 = vsyncpa [#allocation3], 0  ;;  %s125_s0 = inlined_call_operand.hbm [shape: f32[1,1024], index: 0, kind: input, shape index: {}]   ;;  %s126_s1 = inlined_call_operand.hbm [shape: f32[1,1024], index: 1, kind: output, shape index: {}]  }
   0x1   :  { %7 = vsyncpa [#allocation4], 0  ;;  %s89_s6 = smov [#allocation2]   ;;  %s41_s10 = scalar_lea.hbm %s125_s0, 128 }
   0x2   :  { %s14_s7 = sshll.u32 %s89_s6, 4  ;;  %p42_p0 = scmp.ne.s32.totalorder %s125_s0, %s41_s10  ;;  %s15_s7 = int_to_ptr.vmem [resolvable:$true] %s14_s7 }
   0x3   :  { %p45_p1 = scmp.lt.u32.totalorder %s41_s10, %s125_s0 }
   0x5   :  { %p47_p2 = pnand %p45_p1, %p42_p0 }
   0x7   :  { %50 = shalt.err (!%p47_p2)
}
   0x8   :  { %s51_s15 = scalar_lea.vmem %s15_s7, 128  ;;  %p56_p4 = scmp.lt.s32.totalorder %s15_s7, %s15_s7 }
   0x9   :  { %p52_p3 = scmp.ne.s32.totalorder %s15_s7, %s51_s15  ;;  %p57_p5 = scmp.lt.s32.totalorder %s51_s15, %s51_s15 }
   0xb   :  { %p58_p6 = por %p57_p5, %p56_p4 }
   0xd   :  { %p59_p7 = pnand %p58_p6, %p52_p3 }
   0xf   :  { %62 = shalt.err (!%p59_p7)
}
  0x10   :  { %17 = dma.hbm_to_vmem [thread:$0]  %s125_s0, 128, %s15_s7, [#allocation3]  }
  0x11   :  { %85 = dma.done.wait [#allocation3], 128  }
  0x12   :  { %86 = vsyncadd [#allocation3], 4294967168  ;;  %s90_s18 = smov [#allocation5]   ;;  %v21_v0 = vld [vmem:[#allocation2] sm:$0xff] }
  0x13   :  { %s30_s19 = sshll.u32 %s90_s18, 4  ;;  %v22_v1 = vadd.f32 %v21_v0, %v21_v0  ;;  %s31_s19 = int_to_ptr.vmem [resolvable:$true] %s30_s19 }
  0x14   :  { %s63_s20 = scalar_lea.vmem %s31_s19, 128  ;;  %p68_p9 = scmp.lt.s32.totalorder %s31_s19, %s31_s19 }
  0x15   :  { %23 = vst [vmem:[#allocation5] sm:$0xff] %v22_v1  ;;  %p64_p8 = scmp.ne.s32.totalorder %s31_s19, %s63_s20  ;;  %p69_p10 = scmp.lt.s32.totalorder %s63_s20, %s63_s20 }
  0x17   :  { %p70_p11 = por %p69_p10, %p68_p9 }
  0x19   :  { %p71_p12 = pnand %p70_p11, %p64_p8 }
  0x1b   :  { %74 = shalt.err (!%p71_p12)
}
  0x1c   :  { %s75_s23 = scalar_lea.hbm %s126_s1, 128 }
  0x1d   :  { %p76_p13 = scmp.ne.s32.totalorder %s126_s1, %s75_s23  ;;  %p79_p0 = scmp.lt.u32.totalorder %s75_s23, %s126_s1 }
  0x1f   :  { %p81_p1 = pnand %p79_p0, %p76_p13 }
  0x21   :  { %84 = shalt.err (!%p81_p1)
}
  0x22   :  { %33 = dma.vmem_to_hbm [thread:$0]  %s31_s19, 128, %s126_s1, [#allocation4]  }
  0x23   :  { %87 = dma.done.wait [#allocation4], 128  }
  0x24   :  { %88 = vsyncadd [#allocation4], 4294967168 }
  0x25   :  { %37 = vsyncpa [#allocation3], 1 }
  0x26   :  { %38 = vsyncpa [#allocation4], 1 }

</bundles_post_ra>
